<compile_context>
chip_gen: v7x
topology: tpu7x:2x2x1
jax: 0.10.0
libtpu: 0.0.40
codegen_flags: <defaults>
</compile_context>

<pallas_src>
import functools

import jax
import jax.numpy as jnp
from jax import lax
from jax.experimental import pallas as pl
from jax.experimental.pallas import tpu as pltpu


# ----------------------------------------------------------------------------
# Host-side packing of the fused first layer
# ----------------------------------------------------------------------------
def _pack_first_layer(A, B, W1, b1, b2):
    """W_big = [[A.T | W1x], [B.T | W1u]]  (nx+nu, nx+hidden), bias = [b2|b1].

    z = [x|u] @ W_big + bias  =>  z[:, :nx] = x@A.T + u@B.T + b2  (linear part,
    lane-aligned at 0),  z[:, nx:] = cat(x,u)@W1 + b1  (hidden pre-activation).
    """
    nx = A.shape[0]
    W_big = jnp.concatenate(
        [jnp.concatenate([A.T, W1[:nx, :]], axis=1),   # x rows: [A.T | W1x]
         jnp.concatenate([B.T, W1[nx:, :]], axis=1)],  # u rows: [B.T | W1u]
        axis=0)                                         # (nx+nu, nx+hidden)
    bias_big = jnp.concatenate([b2, b1]).reshape(1, -1)
    return W_big, bias_big


# ----------------------------------------------------------------------------
# Fused single-step forward
# ----------------------------------------------------------------------------
def _forward_kernel(xu_ref, wbig_ref, bias_ref, w2_ref, *rest, nx, has_w):
    if has_w:
        w_ref, out_ref = rest
    else:
        w_ref = None
        (out_ref,) = rest

    # One MXU push: [x|u] @ [[A.T|W1x],[B.T|W1u]] + [b2|b1]
    z = jnp.dot(xu_ref[...], wbig_ref[...], preferred_element_type=jnp.float32)
    z = z + bias_ref[...]
    lin = z[:, :nx]                      # x @ A.T + u @ B.T + b2 (lane 0..nx-1)
    h = jnp.tanh(z[:, nx:])              # tanh(cat(x,u) @ W1 + b1)
    out = lin + jnp.dot(h, w2_ref[...], preferred_element_type=jnp.float32)
    if has_w:
        out = out + w_ref[...]
    out_ref[...] = out.astype(out_ref.dtype)


def base_system_forward(x, u, w, A, B, W1, b1, W2, b2, *, tb_max=512):
    """Fused Pallas forward: x @ A.T + u @ B.T + MLP(cat(x,u)) (+ w)."""
    batch, nx = x.shape
    nu = u.shape[1]
    hidden = W1.shape[1]
    nf = nx + hidden
    has_w = w is not None

    W_big, bias_big = _pack_first_layer(A, B, W1, b1, b2)
    xu = jnp.concatenate([x, u], axis=1).astype(jnp.float32)   # (batch, nx+nu)

    # Batch tiling: TB multiple of 8 (f32 sublane).
    TB = max(8, min(tb_max, ((batch + 7) // 8) * 8))
    # v7x megacore: when the batch is large, keep >=2 grid tiles so the
    # "parallel" axis can shard across both TensorCores.
    if batch >= 128 and -(-batch // TB) < 2:
        TB = max(8, ((-(-batch // 2) + 7) // 8) * 8)
    bpad = -(-batch // TB) * TB
    if bpad != batch:
        xu = jnp.pad(xu, ((0, bpad - batch), (0, 0)))
        if has_w:
            w = jnp.pad(w, ((0, bpad - batch), (0, 0)))
    grid = (bpad // TB,)

    in_specs = [
        pl.BlockSpec((TB, nx + nu), lambda i: (i, 0)),   # xu   (tiled)
        pl.BlockSpec((nx + nu, nf), lambda i: (0, 0)),   # W_big (resident)
        pl.BlockSpec((1, nf), lambda i: (0, 0)),         # [b2|b1]
        pl.BlockSpec((hidden, nx), lambda i: (0, 0)),    # W2
    ]
    operands = [xu, W_big, bias_big, W2]
    if has_w:
        in_specs.append(pl.BlockSpec((TB, nx), lambda i: (i, 0)))  # w (tiled)
        operands.append(w.astype(jnp.float32))

    kernel = functools.partial(_forward_kernel, nx=nx, has_w=has_w)

    out = pl.pallas_call(
        kernel,
        out_shape=jax.ShapeDtypeStruct((bpad, nx), jnp.float32),
        grid_spec=pltpu.PrefetchScalarGridSpec(
            num_scalar_prefetch=0,
            grid=grid,
            in_specs=in_specs,
            out_specs=pl.BlockSpec((TB, nx), lambda i: (i, 0)),
        ),
        compiler_params=pltpu.CompilerParams(
            dimension_semantics=("parallel",)),
    )(*operands)
    return out[:batch]


# ----------------------------------------------------------------------------
# Fused rollout (simulate_dynamics with given u_seq / w_seq)
# ----------------------------------------------------------------------------
def _rollout_kernel(x0_ref, u_ref, wlin_ref, wx_ref, wu_ref, bias_ref, w2_ref,
                    out_ref, x_state, zu_sc, *, nx, chunk):
    @pl.when(pl.program_id(0) == 0)
    def _():
        x_state[...] = x0_ref[...]

    # Hoisted, state-independent part of the chunk (one MXU call):
    #   zu[t] = u[t] @ Wu + [b2|b1] + [w[t] | 0]
    zu_sc[...] = (jnp.dot(u_ref[...], wu_ref[...],
                          preferred_element_type=jnp.float32)
                  + bias_ref[...] + wlin_ref[...])

    x0 = x_state[...]                                   # (1, nx)

    def step(t, xc):
        z = jnp.dot(xc, wx_ref[...], preferred_element_type=jnp.float32)
        z = z + zu_sc[pl.ds(t, 1), :]                   # (1, nf)
        lin = z[:, :nx]
        h = jnp.tanh(z[:, nx:])
        xp = lin + jnp.dot(h, w2_ref[...], preferred_element_type=jnp.float32)
        out_ref[pl.ds(t, 1), :] = xp.astype(out_ref.dtype)
        return xp

    unroll = chunk if chunk <= 64 else 8
    x_final = lax.fori_loop(0, chunk, step, x0, unroll=unroll)
    x_state[...] = x_final                              # cross-chunk handoff


def base_system_rollout(x0, u_seq, w_seq, A, B, W1, b1, W2, b2, *,
                        chunk_max=256):
    """Fused T-step rollout: chunked grid, state carried in registers inside
    the chunk loop and handed off via a VMEM scratch across chunks.
    Returns x_1 .. x_T."""
    T, nu = u_seq.shape
    nx = A.shape[0]
    hidden = W1.shape[1]
    nf = nx + hidden

    Wx = jnp.concatenate([A.T, W1[:nx, :]], axis=1)      # (nx, nx+hidden)
    Wu = jnp.concatenate([B.T, W1[nx:, :]], axis=1)      # (nu, nx+hidden)
    bias = jnp.concatenate([b2, b1]).reshape(1, nf)

    CHUNK = min(chunk_max, ((T + 7) // 8) * 8)           # multiple of 8
    T_pad = -(-T // CHUNK) * CHUNK

    u_p = jnp.pad(u_seq.astype(jnp.float32), ((0, T_pad - T), (0, 0)))
    # w folded into the linear lanes [0:nx] of zu; rest zero.
    w_lin = jnp.pad(w_seq.astype(jnp.float32),
                    ((0, T_pad - T), (0, nf - nx)))      # (T_pad, nf)
    x0_2d = x0.reshape(1, nx).astype(jnp.float32)

    kernel = functools.partial(_rollout_kernel, nx=nx, chunk=CHUNK)

    traj = pl.pallas_call(
        kernel,
        out_shape=jax.ShapeDtypeStruct((T_pad, nx), jnp.float32),
        grid_spec=pltpu.PrefetchScalarGridSpec(
            num_scalar_prefetch=0,
            grid=(T_pad // CHUNK,),
            in_specs=[
                pl.BlockSpec((1, nx), lambda c: (0, 0)),        # x0
                pl.BlockSpec((CHUNK, nu), lambda c: (c, 0)),    # u chunk
                pl.BlockSpec((CHUNK, nf), lambda c: (c, 0)),    # [w | 0] chunk
                pl.BlockSpec((nx, nf), lambda c: (0, 0)),       # Wx (resident)
                pl.BlockSpec((nu, nf), lambda c: (0, 0)),       # Wu (resident)
                pl.BlockSpec((1, nf), lambda c: (0, 0)),        # [b2|b1]
                pl.BlockSpec((hidden, nx), lambda c: (0, 0)),   # W2 (resident)
            ],
            out_specs=pl.BlockSpec((CHUNK, nx), lambda c: (c, 0)),
            scratch_shapes=[pltpu.VMEM((1, nx), jnp.float32),       # x state
                            pltpu.VMEM((CHUNK, nf), jnp.float32)],  # zu
        ),
        compiler_params=pltpu.CompilerParams(
            dimension_semantics=("arbitrary",)),  # sequential state dependence
    )(x0_2d, u_p, w_lin, Wx, Wu, bias, W2)
    return traj[:T]

# TODO(synk): batch multiple independent rollouts on a leading "parallel"
# grid axis (per-trajectory state) to use both v7x TensorCores; a single
# serial rollout can only ever occupy one TC.
# TODO(synk): simulate_* variants that close the loop through the learned
# base_policy or draw torch.rand disturbances are not fused; only rollouts
# with user-provided u_seq / w_seq are implemented as a single kernel.


# ----------------------------------------------------------------------------
# Pure-JAX references
# ----------------------------------------------------------------------------
def base_system_reference(x, u, w, A, B, W1, b1, W2, b2):
    xu = jnp.concatenate([x, u], axis=1)
    res = jnp.tanh(xu @ W1 + b1) @ W2 + b2
    out = x @ A.T + u @ B.T + res
    return out + w if w is not None else out


def rollout_reference(x0, u_seq, w_seq, A, B, W1, b1, W2, b2):
    def step(x, inp):
        u, w = inp
        xp = base_system_reference(x, u[None, :], w[None, :],
                                   A, B, W1, b1, W2, b2)
        return xp, xp[0]

    _, traj = lax.scan(step, x0.reshape(1, -1), (u_seq, w_seq))
    return traj


if __name__ == "__main__":
    key = jax.random.PRNGKey(0)
    k = jax.random.split(key, 11)

    batch, nx, nu, hidden, T = 8, 4, 2, 32, 16

    # System matrices (deterministic, synthetic; A scaled for stable rollout)
    A = jax.random.normal(k[0], (nx, nx), dtype=jnp.float32) * 0.3
    B = jax.random.normal(k[1], (nx, nu), dtype=jnp.float32) * 0.5

    # Frozen residual network parameters: (nx+nu) -> hidden -> nx
    W1 = jax.random.normal(k[2], (nx + nu, hidden), dtype=jnp.float32) * 0.1
    b1 = jax.random.normal(k[3], (hidden,), dtype=jnp.float32) * 0.1
    W2 = jax.random.normal(k[4], (hidden, nx), dtype=jnp.float32) * 0.1
    b2 = jax.random.normal(k[5], (nx,), dtype=jnp.float32) * 0.1

    # Single-step inputs
    x = jax.random.normal(k[6], (batch, nx), dtype=jnp.float32)
    u = jax.random.normal(k[7], (batch, nu), dtype=jnp.float32)
    w = jax.random.normal(k[8], (batch, nx), dtype=jnp.float32) * 0.01

    # forward with disturbance
    out = base_system_forward(x, u, w, A, B, W1, b1, W2, b2)
    out = jax.block_until_ready(out)
    ref = base_system_reference(x, u, w, A, B, W1, b1, W2, b2)
    assert out.shape == (batch, nx)
    assert jnp.allclose(out, ref, atol=1e-4, rtol=1e-4), "forward(w) mismatch"

    # forward without disturbance (w=None fast path: no zeros DMA)
    out0 = base_system_forward(x, u, None, A, B, W1, b1, W2, b2)
    out0 = jax.block_until_ready(out0)
    ref0 = base_system_reference(x, u, None, A, B, W1, b1, W2, b2)
    assert jnp.allclose(out0, ref0, atol=1e-4, rtol=1e-4), "forward mismatch"

    # Fused T-step rollout (simulate_dynamics with given u_seq / w_seq)
    x0 = x[0]
    u_seq = jax.random.normal(k[9], (T, nu), dtype=jnp.float32)
    w_seq = jax.random.normal(k[10], (T, nx), dtype=jnp.float32) * 0.01

    traj = base_system_rollout(x0, u_seq, w_seq, A, B, W1, b1, W2, b2)
    traj = jax.block_until_ready(traj)
    traj_ref = rollout_reference(x0, u_seq, w_seq, A, B, W1, b1, W2, b2)
    assert traj.shape == (T, nx)
    assert jnp.allclose(traj, traj_ref, atol=1e-3, rtol=1e-3), "rollout mismatch"

    print("KERNEL_OK")
</pallas_src>

<mosaic_0001>
module attributes {stable_mosaic.version = 11 : i64} {
  func.func @_forward_kernel(%arg0: i32, %arg1: memref<8x6xf32, #tpu.memory_space<vmem>>, %arg2: memref<6x36xf32, #tpu.memory_space<vmem>>, %arg3: memref<1x36xf32, #tpu.memory_space<vmem>>, %arg4: memref<32x4xf32, #tpu.memory_space<vmem>>, %arg5: memref<8x4xf32, #tpu.memory_space<vmem>>, %arg6: memref<8x4xf32, #tpu.memory_space<vmem>>) attributes {dimension_semantics = [#tpu.dimension_semantics<parallel>], iteration_bounds = array<i64: 1>, scalar_prefetch = 0 : i64, scratch_operands = 0 : i64, tpu.core_type = #tpu.core_type<tc>, window_params = [{transform_indices = @transform_0, window_bounds = array<i64: 8, 6>}, {pipeline_mode = #tpu.pipeline_mode<synchronous>, transform_indices = @transform_1, window_bounds = array<i64: 6, 36>}, {pipeline_mode = #tpu.pipeline_mode<synchronous>, transform_indices = @transform_2, window_bounds = array<i64: 1, 36>}, {pipeline_mode = #tpu.pipeline_mode<synchronous>, transform_indices = @transform_3, window_bounds = array<i64: 32, 4>}, {transform_indices = @transform_4, window_bounds = array<i64: 8, 4>}, {transform_indices = @transform_5, window_bounds = array<i64: 8, 4>}]} {
    %c0 = arith.constant 0 : index
    %c0_0 = arith.constant 0 : index
    %0 = vector.load %arg1[%c0, %c0_0] : memref<8x6xf32, #tpu.memory_space<vmem>>, vector<8x6xf32>
    %c0_1 = arith.constant 0 : index
    %c0_2 = arith.constant 0 : index
    %1 = vector.load %arg2[%c0_1, %c0_2] : memref<6x36xf32, #tpu.memory_space<vmem>>, vector<6x36xf32>
    %cst = arith.constant dense<0.000000e+00> : vector<8x36xf32>
    %2 = tpu.matmul %0, %1, %cst {dimension_numbers = #tpu.dot_dimension_numbers<[1], [0], [0], [1], [0, 0, 1, 1], [], []>} : vector<8x6xf32>, vector<6x36xf32>, vector<8x36xf32> -> vector<8x36xf32>
    %c0_3 = arith.constant 0 : index
    %c0_4 = arith.constant 0 : index
    %3 = vector.load %arg3[%c0_3, %c0_4] : memref<1x36xf32, #tpu.memory_space<vmem>>, vector<1x36xf32>
    %4 = vector.broadcast %3 : vector<1x36xf32> to vector<8x36xf32>
    %5 = arith.addf %2, %4 : vector<8x36xf32>
    %6 = vector.extract_strided_slice %5 {offsets = [0, 0], sizes = [8, 4], strides = [1, 1]} : vector<8x36xf32> to vector<8x4xf32>
    %7 = vector.extract_strided_slice %5 {offsets = [0, 4], sizes = [8, 32], strides = [1, 1]} : vector<8x36xf32> to vector<8x32xf32>
    %8 = math.tanh %7 : vector<8x32xf32>
    %c0_5 = arith.constant 0 : index
    %c0_6 = arith.constant 0 : index
    %9 = vector.load %arg4[%c0_5, %c0_6] : memref<32x4xf32, #tpu.memory_space<vmem>>, vector<32x4xf32>
    %cst_7 = arith.constant dense<0.000000e+00> : vector<8x4xf32>
    %10 = tpu.matmul %8, %9, %cst_7 {dimension_numbers = #tpu.dot_dimension_numbers<[1], [0], [0], [1], [0, 0, 1, 1], [], []>} : vector<8x32xf32>, vector<32x4xf32>, vector<8x4xf32> -> vector<8x4xf32>
    %11 = arith.addf %6, %10 : vector<8x4xf32>
    %c0_8 = arith.constant 0 : index
    %c0_9 = arith.constant 0 : index
    %12 = vector.load %arg5[%c0_8, %c0_9] : memref<8x4xf32, #tpu.memory_space<vmem>>, vector<8x4xf32>
    %13 = arith.addf %11, %12 : vector<8x4xf32>
    %c0_10 = arith.constant 0 : index
    %c0_11 = arith.constant 0 : index
    %14 = vector.load %arg6[%c0_10, %c0_11] : memref<8x4xf32, #tpu.memory_space<vmem>>, vector<8x4xf32>
    tpu.vector_store %arg6[%c0_10, %c0_11], %13 {strides = array<i32>} : memref<8x4xf32, #tpu.memory_space<vmem>>, vector<8x4xf32>,
    return
  }
  func.func @transform_0(%arg0: i32) -> (i32, i32) {
    %c0_i32 = arith.constant 0 : i32
    %c0_i32_0 = arith.constant 0 : i32
    return %arg0, %c0_i32 : i32, i32
  }
  func.func @transform_1(%arg0: i32) -> (i32, i32) {
    %c0_i32 = arith.constant 0 : i32
    %c0_i32_0 = arith.constant 0 : i32
    %c0_i32_1 = arith.constant 0 : i32
    return %c0_i32, %c0_i32_0 : i32, i32
  }
  func.func @transform_2(%arg0: i32) -> (i32, i32) {
    %c0_i32 = arith.constant 0 : i32
    %c0_i32_0 = arith.constant 0 : i32
    %c0_i32_1 = arith.constant 0 : i32
    return %c0_i32, %c0_i32_0 : i32, i32
  }
  func.func @transform_3(%arg0: i32) -> (i32, i32) {
    %c0_i32 = arith.constant 0 : i32
    %c0_i32_0 = arith.constant 0 : i32
    %c0_i32_1 = arith.constant 0 : i32
    return %c0_i32, %c0_i32_0 : i32, i32
  }
  func.func @transform_4(%arg0: i32) -> (i32, i32) {
    %c0_i32 = arith.constant 0 : i32
    %c0_i32_0 = arith.constant 0 : i32
    return %arg0, %c0_i32 : i32, i32
  }
  func.func @transform_5(%arg0: i32) -> (i32, i32) {
    %c0_i32 = arith.constant 0 : i32
    %c0_i32_0 = arith.constant 0 : i32
    return %arg0, %c0_i32 : i32, i32
  }
}

</mosaic_0001>

<bundles_post_ra>
// kernel: tpu_custom_call.1
= control target key start
LH: loop header
LB: loop body
LE: loop exit
PB: predicated region body
PF: predicated region fallthrough
CT: control target
= control target key end

     0   :  { %vm33_vm0 = vcmask 1045504   ;;  %vm29_vm1 = vcmask 48128   ;;  %v236_v0 = vmov 0.0   ;;  %vm237_vm2 = vmmov 0   ;;  %s239_s30 = smov 124   ;;  %s297_s1 = inlined_call_operand.vmem [shape: f32[6,36], index: 1, kind: input, shape index: {}]   ;;  %s298_s0 = inlined_call_operand.vmem [shape: f32[8,6], index: 0, kind: input, shape index: {}]   ;;  %s299_s3 = inlined_call_operand.vmem [shape: f32[32,4], index: 3, kind: input, shape index: {}]   ;;  %s300_s2 = inlined_call_operand.vmem [shape: f32[1,36], index: 2, kind: input, shape index: {}]   ;;  %s301_s4 = inlined_call_operand.vmem [shape: f32[8,4], index: 4, kind: input, shape index: {}]   ;;  %s302_s5 = inlined_call_operand.vmem [shape: f32[8,4], index: 5, kind: output, shape index: {}]  }
   0x1   :  { %208 = vmatprep.subr.mxu0 %v236_v0  ;;  %v21_v1 = vld [vmem:[%s297_s1] sm:$0x3f]  ;;  %210 = vmatprep.mubr.msk.f32.mxu0 %vm237_vm2, %v236_v0  ;;  %v238_v3 = vmov 0.0|0.0   ;;  %v109_v5 = vld [vmem:[%s299_s3 + $0x8] sm:$0xff]  ;;  %v110_v6 = vld [vmem:[%s299_s3 + $0x10] sm:$0xff]  ;;  %vm115_vm3 = vcmask 261120  }
   0x2   :  { %v20_v2 = vld [vmem:[%s298_s0] sm:$0xff]  ;;  %209 = vmatpush3.msk.msra.mxu0 %vm33_vm0, %v21_v1  ;;  %221 = vmatprep.mubr.msk.f32.mxu1 %vm237_vm2, %v236_v0  ;;  %v111_v8 = vld [vmem:[%s299_s3 + $0x18] sm:$0xff]  ;;  %vm191_vm4 = vcmask 31744  }
   0x3   :  { %211 = vmatmul.mubr.msk.f32.vlgmr.msra.gmra.mrb[0].mxu0 %vm29_vm1, %v20_v2  ;;  %224 = vmatprep.subr.bf16.mxu1 %v238_v3  ;;  %v108_v4 = vld [vmem:[%s299_s3] sm:$0xff]  ;;  %v228_v9 = vpack.c.bf16 %v111_v8, %v110_v6 }
   0x4   :  { %v225_v7 = vpack.c.bf16 %v109_v5, %v108_v4  ;;  %v197_v10 = vld [vmem:[%s300_s2] ss:$0 sm:$0xff] }
   0x5   :  { %v189_v17 = vld [vmem:[%s301_s4] sm:$0xff] }
   0x6   :  { %226 = vmatpush3.bf16.msra.mxu1 %v225_v7 }
   0x7   :  { %227 = vmatprep.subr.bf16.mxu1 %v238_v3 }
   0xa   :  { %229 = vmatpush3.bf16.msra.mxu1 %v228_v9 }
  0xd6   :  { %v103_v11 = vpop.f32.mrb[0].mxu0 }
  0xd7   :  { %v104_v12 = vadd.f32 %v197_v10, %v103_v11  ;;  %v212_v13 = vpop.f32.mrb[1].mxu0 }
  0xd9   :  { %234 = vtanh.f32 %v104_v12 }
  0xe3   :  { %v235_v14 = vpop.eup %234 }
  0xe4   :  { %113 = vrot.lane.b32.xlu0 %v235_v14, %s239_s30 }
 0x156   :  { %v114_v15 = vpop.permute.xlu0 %113 }
 0x157   :  { %222 = vmatmul.mubr.msk.f32.vlgmr.msra.gmra.mrb[0].mxu1 %vm115_vm3, %v114_v15 }
 0x22a   :  { %v184_v16 = vpop.f32.mrb[0].mxu1 }
 0x22b   :  { %v188_v18 = vadd.f32 %v184_v16, %v104_v12  ;;  %v223_v19 = vpop.f32.mrb[1].mxu1 }
 0x22d   :  { %v190_v20 = vadd.f32 %v189_v17, %v188_v18 }
 0x22f   :  { %192 = vst.msk [vmem:[%s302_s5] sm:$0xff] %vm191_vm4, %v190_v20 }

</bundles_post_ra>
